<compile_context>
chip_gen: v7x
topology: tpu7x:2x2x1
jax: 0.10.0
libtpu: 0.0.40
codegen_flags: <defaults>
</compile_context>

<pallas_src>
import functools

import numpy as np

import jax
import jax.numpy as jnp
from jax import lax
from jax.experimental import pallas as pl
from jax.experimental.pallas import tpu as pltpu


def _cc_loss_kernel(x1_ref, x2_ref, out_ref, acc_ref, *,
                    lambda_param: float, inv_n: float, d_true: int):
    i = pl.program_id(0)          # output row tile (features of x1)
    k = pl.program_id(1)          # streamed batch (reduction) axis
    j = pl.program_id(2)          # output col tile (features of x2), innermost
    nk = pl.num_programs(1)

    td_i = x1_ref.shape[1]
    td_j = x2_ref.shape[1]

    # Per-i running loss lives in the resident output block (index map (i, 0)
    # is constant over k and j); zero it at the start of this i's sweep.
    @pl.when(jnp.logical_and(k == 0, j == 0))
    def _init_out():
        out_ref[...] = jnp.zeros_like(out_ref)

    # Zero this j strip's Gram accumulator at the start of the N sweep.
    @pl.when(k == 0)
    def _init_acc():
        acc_ref[j] = jnp.zeros((td_i, td_j), jnp.float32)

    # Raw Gram accumulation on the MXU (bf16 in, f32 accumulate), contracting
    # the batch (sublane) axis:  S_j += x1_tile.T @ x2_tile
    acc_ref[j] = acc_ref[j] + lax.dot_general(
        x1_ref[...], x2_ref[...],
        dimension_numbers=(((0,), (0,)), ((), ())),
        preferred_element_type=jnp.float32,
    )

    # Finalize this (i, j) tile once the N sweep is complete.
    @pl.when(k == nk - 1)
    def _finalize():
        lam = jnp.float32(lambda_param)
        c = acc_ref[j] * jnp.float32(inv_n)

        rows = i * td_i + lax.broadcasted_iota(jnp.int32, (td_i, td_j), 0)
        cols = j * td_j + lax.broadcasted_iota(jnp.int32, (td_i, td_j), 1)
        # Padded features (global index >= d_true) are all-zero columns; keep
        # them off-diagonal so their (0 - 1)^2 term is excluded exactly.
        is_diag = jnp.logical_and(rows == cols, rows < d_true)

        diff = jnp.where(is_diag, c - 1.0, c)
        sq = diff * diff
        # per-element weight: 1 on the diagonal, lambda off-diagonal
        tile_loss = lam * jnp.sum(sq) + (1.0 - lam) * jnp.sum(
            jnp.where(is_diag, sq, jnp.float32(0.0)))

        out_ref[...] = out_ref[...] + tile_loss


def cross_correlation_loss(x1, x2, lambda_param=0.005, *, td=None, tn=None):
    assert x1.shape == x2.shape and x1.ndim == 2
    n, d = x1.shape

    # --- Standardize in f32 (exact PyTorch order / unbiased std), once, by XLA.
    def _standardize(x):
        xf = x.astype(jnp.float32)
        mu = jnp.mean(xf, axis=0, keepdims=True)
        xc = xf - mu
        var = jnp.sum(xc * xc, axis=0, keepdims=True) / jnp.float32(max(n - 1, 1))
        return xc * lax.rsqrt(var)

    x1s = _standardize(x1)
    x2s = _standardize(x2)

    # --- Tile / padding selection.
    if tn is None:
        tn = 256 if n < 512 else 512           # deep contraction per grid step
    n_pad = -(-n // tn) * tn                    # zero rows: exact for centered data
    d_pad = -(-d // 128) * 128                  # padded features masked in-kernel

    if td is None:
        cands = [c for c in (512, 256, 128) if d_pad % c == 0]
        two_tile = [c for c in cands if d_pad // c >= 2]   # >=2 tiles -> v7x megacore
        td = (two_tile or cands or [d_pad])[0]
        # Keep the (nj, td, td) f32 accumulator modest (v7x has 64 MiB VMEM).
        while td > 128 and d_pad * td * 4 > 24 * 1024 * 1024:
            td //= 2
    assert d_pad % td == 0 and n_pad % tn == 0

    ni = d_pad // td
    nj = d_pad // td
    nk = n_pad // tn

    # bf16 MXU inputs (f32 accumulate in the kernel), zero-padded.
    x1p = jnp.pad(x1s, ((0, n_pad - n), (0, d_pad - d))).astype(jnp.bfloat16)
    x2p = jnp.pad(x2s, ((0, n_pad - n), (0, d_pad - d))).astype(jnp.bfloat16)

    kernel = functools.partial(
        _cc_loss_kernel,
        lambda_param=float(lambda_param),
        inv_n=1.0 / float(n),
        d_true=int(d),
    )

    bs = 2  # bf16 bytes
    footprint = (2 * (2 * tn * td * bs)        # x1 + x2 tiles, double-buffered
                 + nj * td * td * 4            # Gram accumulator strips
                 + 2 * 8 * 128 * 4)            # resident output block
    vmem_limit = int(min(max(int(1.5 * footprint), 16 * 1024 * 1024),
                         48 * 1024 * 1024))

    cost = pl.CostEstimate(
        flops=2 * n_pad * d_pad * d_pad + 8 * d_pad * d_pad,
        transcendentals=0,
        bytes_accessed=(1 + ni) * n_pad * d_pad * bs + ni * 8 * 128 * 4,
    )

    partials = pl.pallas_call(
        kernel,
        out_shape=jax.ShapeDtypeStruct((ni * 8, 128), jnp.float32),
        grid_spec=pltpu.PrefetchScalarGridSpec(
            num_scalar_prefetch=0,
            grid=(ni, nk, nj),                 # j innermost: x1 tile reused across j
            in_specs=[
                pl.BlockSpec((tn, td), lambda i, k, j: (k, i)),   # x1 tile
                pl.BlockSpec((tn, td), lambda i, k, j: (k, j)),   # x2 tile
            ],
            out_specs=pl.BlockSpec((8, 128), lambda i, k, j: (i, 0)),
            scratch_shapes=[pltpu.VMEM((nj, td, td), jnp.float32)],
        ),
        compiler_params=pltpu.CompilerParams(
            dimension_semantics=("parallel", "arbitrary", "arbitrary"),
            vmem_limit_bytes=vmem_limit,
        ),
        cost_estimate=cost,
    )(x1p, x2p)

    # Each element of row-block i holds the same per-i partial loss.
    return jnp.sum(partials[::8, 0])


def cross_correlation_loss_ref(x1, x2, lambda_param=0.005):
    # Exact float64 numpy reference mirroring the PyTorch module.
    x1 = np.asarray(x1, dtype=np.float64)
    x2 = np.asarray(x2, dtype=np.float64)
    n, d = x1.shape
    x1 = (x1 - x1.mean(0)) / x1.std(0, ddof=1)
    x2 = (x2 - x2.mean(0)) / x2.std(0, ddof=1)
    c = x1.T @ x2 / n
    eye = np.eye(d)
    c_diff = (c - eye) ** 2
    c_diff = np.where(eye > 0, c_diff, c_diff * lambda_param)
    return float(c_diff.sum())


if __name__ == "__main__":
    key = jax.random.PRNGKey(0)
    k1, k2, k3 = jax.random.split(key, 3)

    # Case 1: padding on both axes (N=300 -> 512, D=200 -> 256), nk=2 grid,
    # correlated views with non-zero means (exercises the standardization).
    N, D = 300, 200
    base = jax.random.normal(k1, (N, D), dtype=jnp.float32)
    x1 = 1.3 * base + 0.5 + 0.2 * jax.random.normal(k2, (N, D), dtype=jnp.float32)
    x2 = 0.7 * base - 1.0 + 0.3 * jax.random.normal(k3, (N, D), dtype=jnp.float32)

    loss1 = cross_correlation_loss(x1, x2, lambda_param=0.005)
    jax.block_until_ready(loss1)
    ref1 = cross_correlation_loss_ref(x1, x2, lambda_param=0.005)
    assert abs(float(loss1) - ref1) <= 5e-3 * abs(ref1) + 5e-2, (float(loss1), ref1)

    # Case 2: exact-multiple shapes, single k step, 3x3 output tile grid.
    N2, D2 = 256, 384
    k4, k5 = jax.random.split(jax.random.PRNGKey(1))
    y1 = jax.random.normal(k4, (N2, D2), dtype=jnp.float32)
    y2 = jax.random.normal(k5, (N2, D2), dtype=jnp.float32)
    loss2 = cross_correlation_loss(y1, y2, lambda_param=0.005)
    jax.block_until_ready(loss2)
    ref2 = cross_correlation_loss_ref(y1, y2, lambda_param=0.005)
    assert abs(float(loss2) - ref2) <= 5e-3 * abs(ref2) + 5e-2, (float(loss2), ref2)

    print("KERNEL_OK")
</pallas_src>

<mosaic_0001>
module attributes {stable_mosaic.version = 11 : i64} {
  func.func @_cc_loss_kernel(%arg0: i32, %arg1: i32, %arg2: i32, %arg3: memref<256x128xbf16, #tpu.memory_space<vmem>>, %arg4: memref<256x128xbf16, #tpu.memory_space<vmem>>, %arg5: memref<8x128xf32, #tpu.memory_space<vmem>>, %arg6: memref<2x128x128xf32, #tpu.memory_space<vmem>>) attributes {dimension_semantics = [#tpu.dimension_semantics<parallel>, #tpu.dimension_semantics<arbitrary>, #tpu.dimension_semantics<arbitrary>], iteration_bounds = array<i64: 2, 2, 2>, scalar_prefetch = 0 : i64, scratch_operands = 1 : i64, tpu.core_type = #tpu.core_type<tc>, window_params = [{transform_indices = @transform_0, window_bounds = array<i64: 256, 128>}, {transform_indices = @transform_1, window_bounds = array<i64: 256, 128>}, {transform_indices = @transform_2, window_bounds = array<i64: 8, 128>}]} {
    %c0_i32 = arith.constant 0 : i32
    %0 = arith.cmpi eq, %arg1, %c0_i32 : i32
    %c0_i32_0 = arith.constant 0 : i32
    %1 = arith.cmpi eq, %arg2, %c0_i32_0 : i32
    %2 = arith.andi %0, %1 : i1
    %3 = arith.extui %2 : i1 to i32
    %c0_i32_1 = arith.constant 0 : i32
    %4 = arith.cmpi ne, %3, %c0_i32_1 : i32
    scf.if %4 {
      %cst_12 = arith.constant 0.000000e+00 : f32
      %22 = vector.broadcast %cst_12 : f32 to vector<8x128xf32>
      %c0_13 = arith.constant 0 : index
      %c0_14 = arith.constant 0 : index
      %23 = vector.load %arg5[%c0_13, %c0_14] : memref<8x128xf32, #tpu.memory_space<vmem>>, vector<8x128xf32>
      tpu.vector_store %arg5[%c0_13, %c0_14], %22 {strides = array<i32>} : memref<8x128xf32, #tpu.memory_space<vmem>>, vector<8x128xf32>,
    } else {
    }
    %c0_i32_2 = arith.constant 0 : i32
    %5 = arith.cmpi eq, %arg1, %c0_i32_2 : i32
    %6 = arith.extui %5 : i1 to i32
    %c0_i32_3 = arith.constant 0 : i32
    %7 = arith.cmpi ne, %6, %c0_i32_3 : i32
    scf.if %7 {
      %cst_12 = arith.constant 0.000000e+00 : f32
      %22 = vector.broadcast %cst_12 : f32 to vector<128x128xf32>
      %23 = arith.index_cast %arg2 : i32 to index
      %c0_13 = arith.constant 0 : index
      %c0_14 = arith.constant 0 : index
      %24 = vector.load %arg6[%23, %c0_13, %c0_14] : memref<2x128x128xf32, #tpu.memory_space<vmem>>, vector<1x128x128xf32>
      %25 = vector.shape_cast %24 : vector<1x128x128xf32> to vector<128x128xf32>
      %26 = vector.shape_cast %22 : vector<128x128xf32> to vector<1x128x128xf32>
      tpu.vector_store %arg6[%23, %c0_13, %c0_14], %26 {strides = array<i32>} : memref<2x128x128xf32, #tpu.memory_space<vmem>>, vector<1x128x128xf32>,
    } else {
    }
    %8 = arith.index_cast %arg2 : i32 to index
    %c0 = arith.constant 0 : index
    %c0_4 = arith.constant 0 : index
    %9 = vector.load %arg6[%8, %c0, %c0_4] : memref<2x128x128xf32, #tpu.memory_space<vmem>>, vector<1x128x128xf32>
    %10 = vector.shape_cast %9 : vector<1x128x128xf32> to vector<128x128xf32>
    %c0_5 = arith.constant 0 : index
    %c0_6 = arith.constant 0 : index
    %11 = vector.load %arg3[%c0_5, %c0_6] : memref<256x128xbf16, #tpu.memory_space<vmem>>, vector<256x128xbf16>
    %c0_7 = arith.constant 0 : index
    %c0_8 = arith.constant 0 : index
    %12 = vector.load %arg4[%c0_7, %c0_8] : memref<256x128xbf16, #tpu.memory_space<vmem>>, vector<256x128xbf16>
    %cst = arith.constant dense<0.000000e+00> : vector<128x128xf32>
    %13 = tpu.matmul %11, %12, %cst {dimension_numbers = #tpu.dot_dimension_numbers<[0], [0], [1], [1], [0, 1, 1, 1], [], []>} : vector<256x128xbf16>, vector<256x128xbf16>, vector<128x128xf32> -> vector<128x128xf32>
    %14 = arith.addf %10, %13 : vector<128x128xf32>
    %15 = arith.index_cast %arg2 : i32 to index
    %c0_9 = arith.constant 0 : index
    %c0_10 = arith.constant 0 : index
    %16 = vector.load %arg6[%15, %c0_9, %c0_10] : memref<2x128x128xf32, #tpu.memory_space<vmem>>, vector<1x128x128xf32>
    %17 = vector.shape_cast %16 : vector<1x128x128xf32> to vector<128x128xf32>
    %18 = vector.shape_cast %14 : vector<128x128xf32> to vector<1x128x128xf32>
    tpu.vector_store %arg6[%15, %c0_9, %c0_10], %18 {strides = array<i32>} : memref<2x128x128xf32, #tpu.memory_space<vmem>>, vector<1x128x128xf32>,
    %c1_i32 = arith.constant 1 : i32
    %19 = arith.cmpi eq, %arg1, %c1_i32 : i32
    %20 = arith.extui %19 : i1 to i32
    %c0_i32_11 = arith.constant 0 : i32
    %21 = arith.cmpi ne, %20, %c0_i32_11 : i32
    scf.if %21 {
      %22 = arith.index_cast %arg2 : i32 to index
      %c0_12 = arith.constant 0 : index
      %c0_13 = arith.constant 0 : index
      %23 = vector.load %arg6[%22, %c0_12, %c0_13] : memref<2x128x128xf32, #tpu.memory_space<vmem>>, vector<1x128x128xf32>
      %24 = vector.shape_cast %23 : vector<1x128x128xf32> to vector<128x128xf32>
      %cst_14 = arith.constant 0.00333333341 : f32
      %25 = vector.broadcast %cst_14 : f32 to vector<128x128xf32>
      %26 = arith.mulf %24, %25 : vector<128x128xf32>
      %c128_i32 = arith.constant 128 : i32
      %27 = arith.muli %arg0, %c128_i32 : i32
      %28 = tpu.iota {dimensions = array<i32: 0>} : vector<128x128xi32>
      %29 = vector.broadcast %27 : i32 to vector<128x128xi32>
      %30 = arith.addi %29, %28 : vector<128x128xi32>
      %c128_i32_15 = arith.constant 128 : i32
      %31 = arith.muli %arg2, %c128_i32_15 : i32
      %32 = tpu.iota {dimensions = array<i32: 1>} : vector<128x128xi32>
      %33 = vector.broadcast %31 : i32 to vector<128x128xi32>
      %34 = arith.addi %33, %32 : vector<128x128xi32>
      %35 = arith.cmpi eq, %30, %34 : vector<128x128xi32>
      %c200_i32 = arith.constant 200 : i32
      %36 = vector.broadcast %c200_i32 : i32 to vector<128x128xi32>
      %37 = arith.cmpi slt, %30, %36 : vector<128x128xi32>
      %38 = arith.andi %35, %37 : vector<128x128xi1>
      %cst_16 = arith.constant 1.000000e+00 : f32
      %39 = vector.broadcast %cst_16 : f32 to vector<128x128xf32>
      %40 = arith.subf %26, %39 : vector<128x128xf32>
      %41 = arith.select %38, %40, %26 : vector<128x128xi1>, vector<128x128xf32>
      %42 = arith.mulf %41, %41 : vector<128x128xf32>
      %43 = vector.shape_cast %42 : vector<128x128xf32> to vector<1x128x128xf32>
      %cst_17 = arith.constant dense<0.000000e+00> : vector<1xf32>
      %44 = vector.multi_reduction <add>, %43, %cst_17 [1, 2] : vector<1x128x128xf32> to vector<1xf32>
      %45 = vector.shape_cast %44 : vector<1xf32> to vector<1x1x1xf32>
      %46 = vector.extract %45[0, 0, 0] : f32 from vector<1x1x1xf32>
      %cst_18 = arith.constant 5.000000e-03 : f32
      %47 = arith.mulf %cst_18, %46 : f32
      %cst_19 = arith.constant 1.000000e+00 : f32
      %cst_20 = arith.constant 5.000000e-03 : f32
      %48 = arith.subf %cst_19, %cst_20 : f32
      %cst_21 = arith.constant 0.000000e+00 : f32
      %49 = vector.broadcast %cst_21 : f32 to vector<128x128xf32>
      %50 = arith.select %38, %42, %49 : vector<128x128xi1>, vector<128x128xf32>
      %51 = vector.shape_cast %50 : vector<128x128xf32> to vector<1x128x128xf32>
      %cst_22 = arith.constant dense<0.000000e+00> : vector<1xf32>
      %52 = vector.multi_reduction <add>, %51, %cst_22 [1, 2] : vector<1x128x128xf32> to vector<1xf32>
      %53 = vector.shape_cast %52 : vector<1xf32> to vector<1x1x1xf32>
      %54 = vector.extract %53[0, 0, 0] : f32 from vector<1x1x1xf32>
      %55 = arith.mulf %48, %54 : f32
      %56 = arith.addf %47, %55 : f32
      %c0_23 = arith.constant 0 : index
      %c0_24 = arith.constant 0 : index
      %57 = vector.load %arg5[%c0_23, %c0_24] : memref<8x128xf32, #tpu.memory_space<vmem>>, vector<8x128xf32>
      %58 = vector.broadcast %56 : f32 to vector<8x128xf32>
      %59 = arith.addf %57, %58 : vector<8x128xf32>
      %c0_25 = arith.constant 0 : index
      %c0_26 = arith.constant 0 : index
      %60 = vector.load %arg5[%c0_25, %c0_26] : memref<8x128xf32, #tpu.memory_space<vmem>>, vector<8x128xf32>
      tpu.vector_store %arg5[%c0_25, %c0_26], %59 {strides = array<i32>} : memref<8x128xf32, #tpu.memory_space<vmem>>, vector<8x128xf32>,
    } else {
    }
    return
  }
  func.func @transform_0(%arg0: i32, %arg1: i32, %arg2: i32) -> (i32, i32) {
    %c0_i32 = arith.constant 0 : i32
    return %arg1, %arg0 : i32, i32
  }
  func.func @transform_1(%arg0: i32, %arg1: i32, %arg2: i32) -> (i32, i32) {
    %c0_i32 = arith.constant 0 : i32
    return %arg1, %arg2 : i32, i32
  }
  func.func @transform_2(%arg0: i32, %arg1: i32, %arg2: i32) -> (i32, i32) {
    %c0_i32 = arith.constant 0 : i32
    %c0_i32_0 = arith.constant 0 : i32
    return %arg0, %c0_i32 : i32, i32
  }
}

</mosaic_0001>

<bundles_post_ra>
// kernel: tpu_custom_call.1
= control target key start
LH: loop header
LB: loop body
LE: loop exit
PB: predicated region body
PF: predicated region fallthrough
CT: control target
= control target key end

     0   :  { %s2422_s0 = inlined_call_operand.hbm [shape: bf16[512,256], index: 0, kind: input, shape index: {}]   ;;  %s2423_s1 = inlined_call_operand.hbm [shape: bf16[512,256], index: 1, kind: input, shape index: {}]   ;;  %s2424_s2 = inlined_call_operand.hbm [shape: f32[16,128], index: 2, kind: output, shape index: {}]  }
   0x1   :  { %2444 = sst [smem:[#allocation21_spill]] %s2422_s0 }
   0x2   :  { %2445 = sst [smem:[#allocation22_spill]] %s2424_s2 }
   0x3   :  { %7 = vsyncpa [#allocation4], 0 }
   0x4   :  { %9 = vsyncpa [#allocation4 + $0x1], 0 }
   0x5   :  { %10 = vsyncpa [#allocation7], 0 }
   0x6   :  { %12 = vsyncpa [#allocation7 + $0x1], 0 }
   0x7   :  { %13 = vsyncpa [#allocation5], 0 }
   0x8   :  { %15 = vsyncpa [#allocation5 + $0x1], 0  ;;  %s1663_s9 = smov 0   ;;  %s1665_s10 = smov 0  }
   0x9   :  { %s1667_s11 = smov 0   ;;  %s1669_s12 = smov 0  }
   0xa   :  { %s1671_s13 = smov 0   ;;  %s1673_s14 = smov 0  }
   0xb   :  { %s1675_s15 = smov 0   ;;  %s1677_s16 = smov 0  }
   0xc   :  { %s1679_s17 = smov 0   ;;  %s1681_s18 = smov 0  }
   0xd   :  { %s1683_s19 = smov 0   ;;  %s1685_s20 = smov 0  }
   0xe   :  { %s1687_s21 = smov 0   ;;  %s1689_s22 = smov 0  }
   0xf   :  { %s1691_s23 = smov 0   ;;  %s1693_s24 = smov 0  }
  0x10 LB: > { %2446 = sst [smem:[#allocation12_spill]] %s1578_s9  ;;  %s2425_s25 = sadd.s32 4294967295, %s1638_s24   ;;  %s1638_s24 = sphi %s1693_s24, %s21_s24   ;;  %s1634_s23 = sphi %s1691_s23, %s2523_s23   ;;  %s1630_s22 = sphi %s1689_s22, %s2536_s22   ;;  %s1626_s21 = sphi %s1687_s21, %s2535_s21   ;;  %s1622_s20 = sphi %s1685_s20, %s2520_s20   ;;  %s1618_s19 = sphi %s1683_s19, %s2534_s19   ;;  %s1614_s18 = sphi %s1681_s18, %s2533_s18   ;;  %s1610_s17 = sphi %s1679_s17, %s2532_s17   ;;  %s1606_s16 = sphi %s1677_s16, %s2531_s16   ;;  %s1602_s15 = sphi %s1675_s15, %s2530_s15   ;;  %s1598_s14 = sphi %s1673_s14, %s2529_s14   ;;  %s1594_s13 = sphi %s1671_s13, %s2528_s13   ;;  %s1590_s12 = sphi %s1669_s12, %s2527_s12   ;;  %s1586_s11 = sphi %s1667_s11, %s2526_s11   ;;  %s1582_s10 = sphi %s1665_s10, %s2525_s10   ;;  %s1578_s9 = sphi %s1663_s9, %s2524_s9  }
  0x11   : > { %2447 = sst [smem:[#allocation13_spill]] %s1622_s20  ;;  %p56_p0 = scmp.ne.s32.totalorder %s1610_s17, %s1606_s16 }
  0x12   : > { %2448 = sst [smem:[#allocation14_spill]] %s1634_s23  ;;  %p2428_p1 = scmp.eq.s32.totalorder %s1638_s24, 0 }
  0x13   : > { %p62_p2 = scmp.ne.s32.totalorder %s1606_s16, %s1602_s15  ;;  %p1750_p3 = scmp.eq.s32.totalorder %s2425_s25, 0 }
  0x14   : > { %p58_p4 = por %p2428_p1, %p56_p0  ;;  %p2427_p6 = scmp.lt.s32.totalorder %s1638_s24, 8 }
  0x15   : > { %p1759_p5 = por %p1750_p3, %p62_p2  ;;  %s140_s3 = sand.u32 1, %s1610_s17  }
  0x16   : > { %s1073_s4 = sshll.u32 %s140_s3, 7  ;;  %s2426_s5 = sshll.u32 %s1630_s22, 6 }
  0x17   : > { %s2450_s30 = scalar_select %p1759_p5, 1, 0 }
  0x18   : > { %s150_s6 = sadd.s32 %s1634_s23, %s2426_s5  ;;  %s144_s7 = scalar_lea.vmem [#allocation3], %s1073_s4 }
  0x19   : > { %s153_s8 = sshll.u32 %s144_s7, 4  ;;  %s1076_s15 = sshll.u32 %s150_s6, 6  ;;  %s1769_s8 = int_to_ptr.vmem [resolvable:$true] %s153_s8 }
  0x1a   : > { %s2451_s0 = sld [smem:[#allocation21_spill]]  ;;  %p1778_p7 = pnand %p2427_p6, %p58_p4 }
  0x1b   : > { %s1782_s4 = scalar_lea.sflag [#allocation4], %s140_s3 }
  0x1c   : > { %p1414_p9 = pneg %p1778_p7 }
  0x20   : > { %s1774_s26 = scalar_lea.hbm %s2451_s0, %s1076_s15  ;;  %s1417_s7 = scalar_lea.hbm %s2451_s0, 8192 }
  0x21   : > { %s1412_s6 = scalar_lea.hbm %s1774_s26, 2048  ;;  %p1418_p12 = scmp.lt.u32.totalorder %s1774_s26, %s2451_s0 }
  0x22   : > { %p1413_p8 = scmp.ne.s32.totalorder %s1774_s26, %s1412_s6  ;;  %p1419_p13 = scmp.lt.u32.totalorder %s1417_s7, %s1412_s6 }
  0x23   : > { %p1421_p2 = scmp.lt.u32.totalorder %s1412_s6, %s1774_s26 }
  0x24   : > { %p1415_p10 = pnand %p1414_p9, %p1413_p8  ;;  %p1420_p0 = por %p1419_p13, %p1418_p12 }
  0x26   : > { %p1416_p11 = pneg %p1415_p10  ;;  %p1422_p4 = por %p1421_p2, %p1420_p0 }
  0x28   : > { %p1423_p6 = pnand %p1422_p4, %p1416_p11 }
  0x2a   : > { %1426 = shalt.err (!%p1423_p6)
}
  0x2b   : > { %s1427_s3 = scalar_lea.vmem %s1769_s8, 2048  ;;  %s1640_s27 = smov [#allocation3]  }
  0x2c   : > { %p1428_p8 = scmp.ne.s32.totalorder %s1769_s8, %s1427_s3  ;;  %s1432_s29 = sshll.u32 %s1640_s27, 4  ;;  %s1433_s29 = int_to_ptr.vmem [resolvable:$false] %s1432_s29 }
  0x2d   : > { %s1434_s5 = scalar_lea.vmem %s1433_s29, 4096  ;;  %p1435_p5 = scmp.lt.s32.totalorder %s1769_s8, %s1433_s29 }
  0x2e   : > { %p1430_p10 = pnand %p1428_p8, %p1414_p9  ;;  %p1436_p12 = scmp.lt.s32.totalorder %s1434_s5, %s1427_s3 }
  0x30   : > { %p1431_p1 = pneg %p1430_p10  ;;  %p1437_p13 = por %p1436_p12, %p1435_p5 }
  0x32   : > { %p1438_p0 = pnand %p1437_p13, %p1431_p1 }
  0x34   : > { %1441 = shalt.err (!%p1438_p0)
}
  0x35   : > { %s2430_s6 = smov 128   ;;  %s2431_s7 = smov 64  }
  0x36   : > { %s2432_s15 = smov 4   ;;  %p1081_p1 = scmp.ge.s32.totalorder %s1638_s24, 1 }
  0x37   : > { %1237 = dma.hbm_to_vmem [thread:$0]  (!%p1778_p7), %s1774_s26, 2048, %s1769_s8, %s1782_s4, %s2430_s6, %s2431_s7, %s2432_s15  }
  0x38   : > { %p184_p5 = scmp.lt.s32.totalorder %s1638_s24, 9  ;;  %s2453_s3 = sadd.s32 4294967295, %s1638_s24  }
  0x39   : > { %p1817_p6 = scmp.eq.s32.totalorder %s2453_s3, 7  ;;  %s1070_s25 = sadd.s32 4294967294, %s1638_s24  }
  0x3a   : > { %p1821_p9 = pnand %p1081_p1, %p184_p5  ;;  %s33_s26 = sadd.s32 1, %s1626_s21 }
  0x3b   : > { %p34_p7 = scmp.ge.s32.totalorder %s33_s26, 2  ;;  %s77_s8 = sadd.s32 1, %s1598_s14 }
  0x3c   : > { %p84_p11 = scmp.ne.s32.totalorder %s1598_s14, %s1594_s13  ;;  %p90_p2 = scmp.ne.s32.totalorder %s1594_s13, %s1590_s12 }
  0x3d   : > { %s2538_s26 = smov (%p34_p7, %s33_s26), 0  ;;  %s2457_s4 = sadd.s32 1, %s1630_s22 }
  0x3e   : > { %2456 = sst [smem:[#allocation15_spill]] %s2538_s26  ;;  %s2540_s4 = smov (!%p34_p7, %s2457_s4), %s1630_s22 }
  0x3f   : > { %s73_s5 = ssub.s32 %s1626_s21, %s2538_s26  ;;  %s103_s3 = sadd.s32 1, %s1586_s11 }
  0x40   : > { %p38_p4 = scmp.ge.s32.totalorder %s2540_s4, 2  ;;  %p1842_p8 = por %p90_p2, %p1750_p3 }
  0x41   : > { %p113_p10 = scmp.ne.s32.totalorder %s1586_s11, %s1582_s10  ;;  %p119_p12 = scmp.ne.s32.totalorder %s1582_s10, %s1578_s9 }
  0x42   : > { %s2458_s6 = scalar_select %p1842_p8, 1, 0 }
  0x43   : > { %s2542_s4 = smov (%p38_p4, %s2540_s4), 0  ;;  %s2460_s12 = sadd.s32 1, %s1634_s23 }
  0x44   : > { %2459 = sst [smem:[#allocation16_spill]] %s2542_s4  ;;  %s2544_s12 = smov (!%p38_p4, %s2460_s12), %s1634_s23 }
  0x45   : > { %s44_s7 = ssub.s32 %s1630_s22, %s2542_s4  ;;  %p1859_p3 = por %p1817_p6, %p113_p10 }
  0x46   : > { %p42_p13 = scmp.ge.s32.totalorder %s2544_s12, 2  ;;  %s74_s15 = sor.u32 %s73_s5, %s44_s7 }
  0x47   : > { %s2461_s28 = scalar_select %p1859_p3, 1, 0 }
  0x48   : > { %p75_p0 = scmp.eq.s32.totalorder %s74_s15, 0  ;;  %p120_p1 = scmp.eq.s32.totalorder %s1070_s25, 7 }
  0x49   : > { %2462 = sst [smem:[#allocation17_spill]] %s2461_s28  ;;  %s2546_s12 = smov (%p42_p13, %s2544_s12), 0 }
  0x4a   : > { %2463 = sst [smem:[#allocation18_spill]] %s2546_s12  ;;  %s45_s4 = ssub.s32 %s1634_s23, %s2546_s12 }
  0x4b   : > { %s1866_s0 = scalar_select %p75_p0, %s1598_s14, %s77_s8  }
  0x4c   : > { %p1870_p5 = por %p120_p1, %p119_p12  ;;  %s46_s26 = sor.u32 %s45_s4, %s44_s7 }
  0x4d   : > { %2464 = sst [smem:[#allocation19_spill]] %s1866_s0  ;;  %p101_p6 = scmp.eq.s32.totalorder %s45_s4, 0 }
  0x4e   : > { %s2465_s27 = scalar_select %p1870_p5, 1, 0 }
  0x4f   : > { %p47_p7 = scmp.eq.s32.totalorder %s46_s26, 0  ;;  %s163_s9 = sand.u32 1, %s1598_s14  }
  0x50   : > { %2466 = sst [smem:[#allocation20_spill]] %s2465_s27  ;;  %s2467_s5 = sadd.s32 1, %s1610_s17 }
  0x51   : > { %s1876_s2 = scalar_select %p101_p6, %s1586_s11, %s103_s3  }
  0x52   : > { %s1881_s15 = scalar_select %p47_p7, %s1610_s17, %s2467_s5  }
  0x53   : > { %p2468_p2 = scmp.eq.s32.totalorder %s1638_s24, 0  ;;  %s1077_s25 = sshll.u32 %s163_s9, 7 }
  0x54   : > { %s2469_s8 = sshll.u32 %s1630_s22, 6  ;;  %s167_s0 = scalar_lea.vmem [#allocation6], %s1077_s25 }
  0x55   : > { %p86_p4 = por %p84_p11, %p2468_p2  ;;  %s173_s12 = sadd.s32 %s1626_s21, %s2469_s8 }
  0x56   : > { %s1080_s23 = sshll.u32 %s173_s12, 6  ;;  %s176_s28 = sshll.u32 %s167_s0, 4  ;;  %s1896_s28 = int_to_ptr.vmem [resolvable:$true] %s176_s28 }
  0x57   : > { %s1894_s7 = scalar_lea.hbm %s2423_s1, %s1080_s23  ;;  %p2470_p10 = scmp.lt.s32.totalorder %s1638_s24, 8 }
  0x58   : > { %s1904_s4 = scalar_lea.sflag [#allocation7], %s163_s9  ;;  %s1442_s0 = scalar_lea.hbm %s1894_s7, 2048 }
  0x59   : > { %p1900_p12 = pnand %p2470_p10, %p86_p4  ;;  %p1443_p11 = scmp.ne.s32.totalorder %s1894_s7, %s1442_s0 }
  0x5a   : > { %s1447_s3 = scalar_lea.hbm %s2423_s1, 8192  ;;  %p1448_p6 = scmp.lt.u32.totalorder %s1894_s7, %s2423_s1 }
  0x5b   : > { %p1444_p13 = pneg %p1900_p12  ;;  %p1449_p7 = scmp.lt.u32.totalorder %s1447_s3, %s1442_s0 }
  0x5c   : > { %p1451_p4 = scmp.lt.u32.totalorder %s1442_s0, %s1894_s7 }
  0x5d   : > { %p1445_p0 = pnand %p1444_p13, %p1443_p11  ;;  %p1450_p2 = por %p1449_p7, %p1448_p6 }
  0x5f   : > { %p1446_p1 = pneg %p1445_p0  ;;  %p1452_p10 = por %p1451_p4, %p1450_p2 }
  0x61   : > { %p1453_p5 = pnand %p1452_p10, %p1446_p1 }
  0x63   : > { %1456 = shalt.err (!%p1453_p5)
}
  0x64   : > { %s1457_s9 = scalar_lea.vmem %s1896_s28, 2048  ;;  %s1644_s5 = smov [#allocation6]  }
  0x65   : > { %p1458_p11 = scmp.ne.s32.totalorder %s1896_s28, %s1457_s9  ;;  %s1462_s25 = sshll.u32 %s1644_s5, 4  ;;  %s1463_s25 = int_to_ptr.vmem [resolvable:$false] %s1462_s25 }
  0x66   : > { %s1464_s8 = scalar_lea.vmem %s1463_s25, 4096  ;;  %p1465_p8 = scmp.lt.s32.totalorder %s1896_s28, %s1463_s25 }
  0x67   : > { %p1460_p0 = pnand %p1458_p11, %p1444_p13  ;;  %p1466_p6 = scmp.lt.s32.totalorder %s1464_s8, %s1457_s9 }
  0x69   : > { %p1461_p3 = pneg %p1460_p0  ;;  %p1467_p7 = por %p1466_p6, %p1465_p8 }
  0x6b   : > { %p1468_p2 = pnand %p1467_p7, %p1461_p3 }
  0x6d   : > { %1471 = shalt.err (!%p1468_p2)
}
  0x6e   : > { %s2472_s0 = smov 4   ;;  %s2473_s20 = smov 64  }
  0x6f   : > { %s2474_s23 = smov 128   ;;  %188 = sbr.rel (%p1821_p9) target bundleno = 789 (0x315), region = 28 }
  0x70   : > { %1240 = dma.hbm_to_vmem [thread:$0]  (!%p1900_p12), %s1894_s7, 2048, %s1896_s28, %s1904_s4, %s2474_s23, %s2473_s20, %s2472_s0  }
  0x71   : > { %s190_s3 = sand.u32 (!%p1821_p9), 1, %s1606_s16   ;;  %p2475_p8 = scmp.ne.s32.totalorder (!%p1821_p9), %s2450_s30, 0 }
  0x72   : > { %s1082_s12 = sshll.u32 (!%p1821_p9), %s190_s3, 7  ;;  %s191_s27 = scalar_lea.sflag (!%p1821_p9), [#allocation4], %s190_s3 }
  0x73   : > { %s1938_s9 = scalar_lea.vmem (!%p1821_p9), [#allocation3], %s1082_s12 }
  0x76   : > { %1565 = dma.done.wait (%p2475_p8), %s191_s27, 2048  }
  0x77   : > { %1567 = vsyncadd (%p2475_p8), %s191_s27, 4294965248  ;;  %s199_s26 = sand.u32 1, %s1594_s13   ;;  %p2476_p9 = scmp.ne.s32.totalorder %s2458_s6, 0 }
  0x78   : > { %s1083_s5 = sshll.u32 %s199_s26, 7  ;;  %s200_s28 = scalar_lea.sflag [#allocation7], %s199_s26 }
  0x79   : > { %s1945_s7 = scalar_lea.vmem [#allocation6], %s1083_s5 }
  0x7a   : > { %1569 = dma.done.wait (%p2476_p9), %s200_s28, 2048  }
  0x7b   : > { %1571 = vsyncadd (%p2476_p9), %s200_s28, 4294965248  ;;  %s226_s29 = sand.u32 1, %s1582_s10   ;;  %p232_p3 = scmp.eq.s32.totalorder %s1618_s19, 0 }
  0x7c   : > { %s1084_s30 = sshll.u32 %s226_s29, 3  ;;  %p233_p5 = scmp.eq.s32.totalorder %s1614_s18, 0 }
  0x7d   : > { %s1956_s4 = scalar_lea.vmem [#allocation8], %s1084_s30 }
  0x7e   : > { %p234_p12 = pnand %p233_p5, %p232_p3 }
  0x7f   : > { %v1645_v0 = vmov (!%p234_p12), 0.0  }
  0x80   : > { %237 = sbr.rel (%p234_p12) target bundleno = 135 (0x87), region = 40  ;;  %238 = vst [vmem:[%s1956_s4] sm:$0xff] (!%p234_p12), %v1645_v0 }
  0x87 PF: > { %p1085_p13 = scmp.ne.s32.totalorder %s1618_s19, 0 }
  0x88   : > { %s1086_s6 = sshll.u32 (!%p1085_p13), %s1614_s18, 7  ;;  %v1646_v1 = vmov (!%p1085_p13), 0.0  }
  0x89   : > { %241 = sbr.rel (%p1085_p13) target bundleno = 146 (0x92), region = 44  ;;  %s243_s25 = scalar_lea.vmem (!%p1085_p13), [#allocation2], %s1086_s6 }
  0x8a   : > { %244 = vst [vmem:[%s243_s25] sm:$0xff] (!%p1085_p13), %v1646_v1  ;;  %245 = vst [vmem:[%s243_s25 + $0x8] sm:$0xff] (!%p1085_p13), %v1646_v1 }
  0x8b   : > { %246 = vst [vmem:[%s243_s25 + $0x10] sm:$0xff] (!%p1085_p13), %v1646_v1  ;;  %247 = vst [vmem:[%s243_s25 + $0x18] sm:$0xff] (!%p1085_p13), %v1646_v1 }
  0x8c   : > { %248 = vst [vmem:[%s243_s25 + $0x20] sm:$0xff] (!%p1085_p13), %v1646_v1  ;;  %249 = vst [vmem:[%s243_s25 + $0x28] sm:$0xff] (!%p1085_p13), %v1646_v1 }
  0x8d   : > { %250 = vst [vmem:[%s243_s25 + $0x30] sm:$0xff] (!%p1085_p13), %v1646_v1  ;;  %251 = vst [vmem:[%s243_s25 + $0x38] sm:$0xff] (!%p1085_p13), %v1646_v1 }
  0x8e   : > { %252 = vst [vmem:[%s243_s25 + $0x40] sm:$0xff] (!%p1085_p13), %v1646_v1  ;;  %253 = vst [vmem:[%s243_s25 + $0x48] sm:$0xff] (!%p1085_p13), %v1646_v1 }
  0x8f   : > { %254 = vst [vmem:[%s243_s25 + $0x50] sm:$0xff] (!%p1085_p13), %v1646_v1  ;;  %255 = vst [vmem:[%s243_s25 + $0x58] sm:$0xff] (!%p1085_p13), %v1646_v1 }
  0x90   : > { %256 = vst [vmem:[%s243_s25 + $0x60] sm:$0xff] %v1646_v1  ;;  %257 = vst [vmem:[%s243_s25 + $0x68] sm:$0xff] %v1646_v1 }
  0x91   : > { %258 = vst [vmem:[%s243_s25 + $0x70] sm:$0xff] %v1646_v1  ;;  %259 = vst [vmem:[%s243_s25 + $0x78] sm:$0xff] %v1646_v1 }
  0x92 PF: > { %v1380_v2 = vld [vmem:[%s1938_s9 + $0x40] sm:$0xff]   ;;  %v1382_v4 = vld [vmem:[%s1938_s9 + $0x48] sm:$0xff]   ;;  %v1384_v6 = vld [vmem:[%s1938_s9 + $0x50] sm:$0xff]   ;;  %s1087_s8 = sshll.u32 %s1614_s18, 7  ;;  %p1120_p1 = scmp.ne.s32.totalorder %s1618_s19, 1 }
  0x93   : > { %v1381_v3 = vld [vmem:[%s1938_s9] sm:$0xff]   ;;  %454 = vxpose.xlu0.c.b16.start [1/8] %v1380_v2, 128  ;;  %v1383_v5 = vld [vmem:[%s1938_s9 + $0x8] sm:$0xff]   ;;  %v1385_v7 = vld [vmem:[%s1938_s9 + $0x10] sm:$0xff]   ;;  %s1996_s0 = scalar_lea.vmem [#allocation2], %s1087_s8  ;;  %s2477_s20 = sld [smem:[#allocation13_spill]] (!%p1120_p1) }
  0x94   : > { %438 = vxpose.xlu1.c.b16.start [1/8] %v1381_v3, 128  ;;  %v1386_v8 = vld [vmem:[%s1938_s9 + $0x58] sm:$0xff]   ;;  %v1388_v10 = vld [vmem:[%s1938_s9 + $0x60] sm:$0xff]   ;;  %v1390_v12 = vld [vmem:[%s1938_s9 + $0x68] sm:$0xff]  }
  0x95   : > { %v1387_v9 = vld [vmem:[%s1938_s9 + $0x18] sm:$0xff]   ;;  %v1389_v11 = vld [vmem:[%s1938_s9 + $0x20] sm:$0xff]   ;;  %v1391_v14 = vld [vmem:[%s1938_s9 + $0x28] sm:$0xff]  }
  0x96   : > { %v1396_v13 = vld [vmem:[%s1945_s7 + $0x40] sm:$0xff]   ;;  %v1398_v16 = vld [vmem:[%s1945_s7 + $0x48] sm:$0xff]   ;;  %v1400_v18 = vld [vmem:[%s1945_s7 + $0x50] sm:$0xff]  }
  0x97   : > { %455 = vxpose.xlu0.c.b16.cont [2/8] %v1382_v4, 128  ;;  %v1397_v15 = vld [vmem:[%s1945_s7] sm:$0xff]   ;;  %1144 = vmatprep.subr.bf16.mxu0 %v1396_v13  ;;  %v1399_v17 = vld [vmem:[%s1945_s7 + $0x8] sm:$0xff]   ;;  %v1392_v19 = vld [vmem:[%s1938_s9 + $0x70] sm:$0xff]  }
  0x98   : > { %439 = vxpose.xlu1.c.b16.cont [2/8] %v1383_v5, 128  ;;  %1145 = vmatpush3.bf16.msra.mxu0 %v1397_v15  ;;  %v1393_v20 = vld [vmem:[%s1938_s9 + $0x30] sm:$0xff]   ;;  %v1402_v22 = vld [vmem:[%s1945_s7 + $0x58] sm:$0xff]   ;;  %v1404_v26 = vld [vmem:[%s1945_s7 + $0x60] sm:$0xff]  }
  0x99   : > { %1146 = vmatprep.subr.bf16.mxu0 %v1398_v16  ;;  %1208 = vmatprep.subr.bf16.mxu1 %v1396_v13  ;;  %v1401_v21 = vld [vmem:[%s1945_s7 + $0x10] sm:$0xff]   ;;  %v1394_v23 = vld [vmem:[%s1938_s9 + $0x78] sm:$0xff]   ;;  %v1405_v27 = vld [vmem:[%s1945_s7 + $0x20] sm:$0xff]   ;;  %s1121_s23 = sshll.u32 (!%p1120_p1), %s2477_s20, 7 }
  0x9a   : > { %1216 = vmatpush3.bf16.msra.mxu1 %v1397_v15  ;;  %v1395_v24 = vld [vmem:[%s1938_s9 + $0x38] sm:$0xff]   ;;  %v1406_v28 = vld [vmem:[%s1945_s7 + $0x68] sm:$0xff]   ;;  %v1408_v30 = vld [vmem:[%s1945_s7 + $0x70] sm:$0xff]  }
  0x9b   : > { %456 = vxpose.xlu0.c.b16.cont [3/8] %v1384_v6, 128  ;;  %1209 = vmatprep.subr.bf16.mxu1 %v1398_v16  ;;  %v1403_v25 = vld [vmem:[%s1945_s7 + $0x18] sm:$0xff]   ;;  %v1407_v29 = vld [vmem:[%s1945_s7 + $0x28] sm:$0xff]   ;;  %v1409_v31 = vld [vmem:[%s1945_s7 + $0x30] sm:$0xff]  }
  0x9c   : > { %440 = vxpose.xlu1.c.b16.cont [3/8] %v1385_v7, 128  ;;  %1147 = vmatpush3.bf16.msra.mxu0 %v1399_v17  ;;  %v1410_v32 = vld [vmem:[%s1945_s7 + $0x78] sm:$0xff]   ;;  %v262_v51 = vld [vmem:[%s1996_s0] sm:$0xff]  ;;  %v263_v55 = vld [vmem:[%s1996_s0 + $0x8] sm:$0xff] }
  0x9d   : > { %1148 = vmatprep.subr.bf16.mxu0 %v1400_v18  ;;  %v1411_v33 = vld [vmem:[%s1945_s7 + $0x38] sm:$0xff]   ;;  %v264_v61 = vld [vmem:[%s1996_s0 + $0x10] sm:$0xff]  ;;  %v267_v16 = vld [vmem:[%s1996_s0 + $0x28] sm:$0xff] }
  0x9e   : > { %1217 = vmatpush3.bf16.msra.mxu1 %v1399_v17  ;;  %v265_v1 = vld [vmem:[%s1996_s0 + $0x18] sm:$0xff] }
  0x9f   : > { %457 = vxpose.xlu0.c.b16.cont [4/8] %v1386_v8, 128  ;;  %1210 = vmatprep.subr.bf16.mxu1 %v1400_v18  ;;  %v266_v8 = vld [vmem:[%s1996_s0 + $0x20] sm:$0xff]  ;;  %v271_v18 = vld [vmem:[%s1996_s0 + $0x48] sm:$0xff] }
  0xa0   : > { %441 = vxpose.xlu1.c.b16.cont [4/8] %v1387_v9, 128  ;;  %1149 = vmatpush3.bf16.msra.mxu0 %v1401_v21 }
  0xa1   : > { %1150 = vmatprep.subr.bf16.mxu0 %v1402_v22 }
  0xa2   : > { %1218 = vmatpush3.bf16.msra.mxu1 %v1401_v21 }
  0xa3   : > { %458 = vxpose.xlu0.c.b16.cont [5/8] %v1388_v10, 128  ;;  %1211 = vmatprep.subr.bf16.mxu1 %v1402_v22  ;;  %v270_v10 = vld [vmem:[%s1996_s0 + $0x40] sm:$0xff] }
  0xa4   : > { %442 = vxpose.xlu1.c.b16.cont [5/8] %v1389_v11, 128  ;;  %1151 = vmatpush3.bf16.msra.mxu0 %v1403_v25 }
  0xa5   : > { %1152 = vmatprep.subr.bf16.mxu0 %v1404_v26 }
  0xa6   : > { %1219 = vmatpush3.bf16.msra.mxu1 %v1403_v25 }
  0xa7   : > { %459 = vxpose.xlu0.c.b16.cont [6/8] %v1390_v12, 128  ;;  %1212 = vmatprep.subr.bf16.mxu1 %v1404_v26 }
  0xa8   : > { %443 = vxpose.xlu1.c.b16.cont [6/8] %v1391_v14, 128  ;;  %1153 = vmatpush3.bf16.msra.mxu0 %v1405_v27 }
  0xa9   : > { %1154 = vmatprep.subr.bf16.mxu0 %v1406_v28 }
  0xaa   : > { %1220 = vmatpush3.bf16.msra.mxu1 %v1405_v27 }
  0xab   : > { %460 = vxpose.xlu0.c.b16.cont [7/8] %v1392_v19, 128  ;;  %1213 = vmatprep.subr.bf16.mxu1 %v1406_v28  ;;  %v268_v28 = vld [vmem:[%s1996_s0 + $0x30] sm:$0xff] }
  0xac   : > { %444 = vxpose.xlu1.c.b16.cont [7/8] %v1393_v20, 128  ;;  %1155 = vmatpush3.bf16.msra.mxu0 %v1407_v29 }
  0xad   : > { %1156 = vmatprep.subr.bf16.mxu0 %v1408_v30 }
  0xae   : > { %1221 = vmatpush3.bf16.msra.mxu1 %v1407_v29 }
  0xaf   : > { %461 = vxpose.xlu0.c.b16.end [8/8] %v1394_v23, 128  ;;  %1214 = vmatprep.subr.bf16.mxu1 %v1408_v30  ;;  %v272_v30 = vld [vmem:[%s1996_s0 + $0x50] sm:$0xff] }
  0xb0   : > { %445 = vxpose.xlu1.c.b16.end [8/8] %v1395_v24, 128  ;;  %1157 = vmatpush3.bf16.msra.mxu0 %v1409_v31 }
  0xb1   : > { %1158 = vmatprep.subr.bf16.mxu0 %v1410_v32 }
  0xb2   : > { %1222 = vmatpush3.bf16.msra.mxu1 %v1409_v31 }
  0xb3   : > { %1215 = vmatprep.subr.bf16.mxu1 %v1410_v32 }
  0xb4   : > { %1159 = vmatpush3.bf16.msra.mxu0 %v1411_v33 }
  0xb6   : > { %1223 = vmatpush3.bf16.msra.mxu1 %v1411_v33 }
  0xf9   : > { %v462_v34 = vpop.trf.xlu0 }
  0xfa   : > { %598 = vmatprep.mubr.bf16.mxu0 %v462_v34  ;;  %v446_v35 = vpop.trf.xlu1 }
  0xfb   : > { %599 = vmatmul.mubr.bf16.vlgmr.msra.gmra.mrb[0].mxu0 %v446_v35 }
  0xfd   : > { %v463_v36 = vpop.trf.xlu0 }
  0xfe   : > { %606 = vmatprep.mubr.bf16.mxu0 %v463_v36  ;;  %v447_v37 = vpop.trf.xlu1  ;;  %v269_v36 = vld [vmem:[%s1996_s0 + $0x38] sm:$0xff] }
 0x101   : > { %v464_v38 = vpop.trf.xlu0 }
 0x102   : > { %v448_v39 = vpop.trf.xlu1 }
 0x103   : > { %607 = vmatmul.mubr.bf16.gmra.mrb[4].mxu0 %v447_v37 }
 0x104   : > { %614 = vmatprep.mubr.bf16.mxu0 %v464_v38  ;;  %v273_v38 = vld [vmem:[%s1996_s0 + $0x58] sm:$0xff] }
 0x105   : > { %v465_v40 = vpop.trf.xlu0 }
 0x106   : > { %v449_v41 = vpop.trf.xlu1 }
 0x109   : > { %v466_v42 = vpop.trf.xlu0 }
 0x10a   : > { %630 = vmatprep.mubr.bf16.mxu1 %v466_v42  ;;  %v450_v43 = vpop.trf.xlu1 }
 0x10b   : > { %615 = vmatmul.mubr.bf16.gmra.mrb[8].mxu0 %v448_v39  ;;  %631 = vmatmul.mubr.bf16.vlgmr.msra.gmra.mrb[0].mxu1 %v450_v43 }
 0x10c   : > { %622 = vmatprep.mubr.bf16.mxu0 %v465_v40 }
 0x10d   : > { %v467_v44 = vpop.trf.xlu0 }
 0x10e   : > { %638 = vmatprep.mubr.bf16.mxu1 %v467_v44  ;;  %v451_v45 = vpop.trf.xlu1 }
 0x111   : > { %v468_v46 = vpop.trf.xlu0 }
 0x112   : > { %v452_v47 = vpop.trf.xlu1 }
 0x113   : > { %623 = vmatmul.mubr.bf16.gmra.mrb[12].mxu0 %v449_v41  ;;  %639 = vmatmul.mubr.bf16.gmra.mrb[4].mxu1 %v451_v45 }
 0x114   : > { %646 = vmatprep.mubr.bf16.mxu1 %v468_v46 }
 0x115   : > { %v469_v48 = vpop.trf.xlu0 }
 0x116   : > { %v453_v49 = vpop.trf.xlu1 }
 0x11b   : > { %647 = vmatmul.mubr.bf16.gmra.mrb[8].mxu1 %v452_v47  ;;  %v274_v47 = vld [vmem:[%s1996_s0 + $0x60] sm:$0xff] }
 0x11c   : > { %654 = vmatprep.mubr.bf16.mxu1 %v469_v48 }
 0x123   : > { %655 = vmatmul.mubr.bf16.gmra.mrb[12].mxu1 %v453_v49 }
 0x1ce   : > { %v1160_v50 = vpop.f32.mrb[0].mxu0 }
 0x1cf   : > { %v1161_v52 = vpop.f32.mrb[1].mxu0 }
 0x1d0   : > { %v1162_v53 = vadd.f32 %v1161_v52, %v1160_v50  ;;  %v1163_v54 = vpop.f32.mrb[2].mxu0 }
 0x1d1   : > { %v1164_v56 = vpop.f32.mrb[3].mxu0 }
 0x1d2   : > { %v663_v57 = vadd.f32 %v1162_v53, %v262_v51  ;;  %v1165_v58 = vadd.f32 %v1164_v56, %v1163_v54  ;;  %v275_v51 = vld [vmem:[%s1996_s0 + $0x68] sm:$0xff] }
 0x1d4   : > { %679 = vst [vmem:[%s1996_s0] sm:$0xff] %v663_v57  ;;  %v664_v59 = vadd.f32 %v1165_v58, %v263_v55  ;;  %v276_v57 = vld [vmem:[%s1996_s0 + $0x70] sm:$0xff] }
 0x1d6   : > { %680 = vst [vmem:[%s1996_s0 + $0x8] sm:$0xff] %v664_v59  ;;  %v1166_v60 = vpop.f32.mrb[4].mxu0 }
 0x1d7   : > { %v1167_v62 = vpop.f32.mrb[5].mxu0 }
 0x1d8   : > { %v1168_v63 = vadd.f32 %v1167_v62, %v1166_v60  ;;  %v1169_v0 = vpop.f32.mrb[6].mxu0 }
 0x1d9   : > { %v1170_v2 = vpop.f32.mrb[7].mxu0 }
 0x1da   : > { %v665_v3 = vadd.f32 %v1168_v63, %v264_v61  ;;  %v1171_v4 = vadd.f32 %v1170_v2, %v1169_v0  ;;  %v277_v61 = vld [vmem:[%s1996_s0 + $0x78] sm:$0xff]  ;;  %v732_v2 = vlaneseq (!%p1120_p1) }
 0x1dc   : > { %681 = vst [vmem:[%s1996_s0 + $0x10] sm:$0xff] %v665_v3  ;;  %v666_v5 = vadd.f32 %v1171_v4, %v265_v1  ;;  %v699_v3 = vld [vmem:[%s1996_s0] sm:$0xff] (!%p1120_p1)  ;;  %v2033_v4 = vshrl.u32 (!%p1120_p1), %v732_v2, 7 }
 0x1de   : > { %682 = vst [vmem:[%s1996_s0 + $0x18] sm:$0xff] %v666_v5  ;;  %v1172_v6 = vpop.f32.mrb[8].mxu0  ;;  %v1184_v7 = vpop.f32.mrb[0].mxu1  ;;  %v700_v5 = vld [vmem:[%s1996_s0 + $0x8] sm:$0xff] (!%p1120_p1) }
 0x1df   : > { %v1173_v9 = vpop.f32.mrb[9].mxu0  ;;  %v1185_v11 = vpop.f32.mrb[1].mxu1 }
 0x1e0   : > { %v1174_v12 = vadd.f32 %v1173_v9, %v1172_v6  ;;  %v1186_v13 = vadd.f32 %v1185_v11, %v1184_v7  ;;  %v1175_v14 = vpop.f32.mrb[10].mxu0  ;;  %v1187_v15 = vpop.f32.mrb[2].mxu1  ;;  %v2042_v11 = vstv (!%p1120_p1), %s1121_s23 }
 0x1e1   : > { %v1176_v17 = vpop.f32.mrb[11].mxu0  ;;  %v1188_v19 = vpop.f32.mrb[3].mxu1 }
 0x1e2   : > { %v667_v20 = vadd.f32 %v1174_v12, %v266_v8  ;;  %v671_v21 = vadd.f32 %v1186_v13, %v270_v10  ;;  %v1177_v22 = vadd.f32 %v1176_v17, %v1175_v14  ;;  %v1189_v23 = vadd.f32 %v1188_v19, %v1187_v15 }
 0x1e3   : > { %v701_v6 = vld [vmem:[%s1996_s0 + $0x10] sm:$0xff] (!%p1120_p1)  ;;  %v2040_v10 = vmul.f32 (!%p1120_p1), 0.0033333334, %v699_v3  ;;  %v767_v12 = vand.u32 (!%p1120_p1), 127, %v732_v2  ;;  %v734_v17 = vadd.s32 (!%p1120_p1), 8, %v2033_v4  ;;  %v747_v3 = vadd.s32 (!%p1120_p1), 112, %v2033_v4 }
 0x1e4   : > { %683 = vst [vmem:[%s1996_s0 + $0x20] sm:$0xff] %v667_v20  ;;  %687 = vst [vmem:[%s1996_s0 + $0x40] sm:$0xff] %v671_v21  ;;  %v668_v24 = vadd.f32 %v1177_v22, %v267_v16  ;;  %v672_v25 = vadd.f32 %v1189_v23, %v271_v18  ;;  %v2047_v16 = vmul.f32 (!%p1120_p1), 0.0033333334, %v700_v5  ;;  %v768_v18 = vstv (!%p1120_p1), %s1087_s8 }
 0x1e5   : > { %v702_v7 = vld [vmem:[%s1996_s0 + $0x18] sm:$0xff] (!%p1120_p1)  ;;  %v2055_v22 = vmul.f32 (!%p1120_p1), 0.0033333334, %v701_v6  ;;  %v735_v23 = vadd.s32 (!%p1120_p1), 16, %v2033_v4 }
 0x1e6   : > { %684 = vst [vmem:[%s1996_s0 + $0x28] sm:$0xff] %v668_v24  ;;  %688 = vst [vmem:[%s1996_s0 + $0x48] sm:$0xff] %v672_v25  ;;  %v1178_v26 = vpop.f32.mrb[12].mxu0  ;;  %v1190_v27 = vpop.f32.mrb[4].mxu1 }
 0x1e7   : > { %v1179_v29 = vpop.f32.mrb[13].mxu0  ;;  %v1191_v31 = vpop.f32.mrb[5].mxu1 }
 0x1e8   : > { %v1180_v32 = vadd.f32 %v1179_v29, %v1178_v26  ;;  %v1192_v33 = vadd.f32 %v1191_v31, %v1190_v27  ;;  %v1181_v34 = vpop.f32.mrb[14].mxu0  ;;  %v1193_v35 = vpop.f32.mrb[6].mxu1  ;;  %v2060_v26 = vmul.f32 (!%p1120_p1), 0.0033333334, %v702_v7 }
 0x1e9   : > { %v1182_v37 = vpop.f32.mrb[15].mxu0  ;;  %v1194_v39 = vpop.f32.mrb[7].mxu1 }
 0x1ea   : > { %v669_v40 = vadd.f32 %v1180_v32, %v268_v28  ;;  %v673_v41 = vadd.f32 %v1192_v33, %v272_v30  ;;  %v1183_v42 = vadd.f32 %v1182_v37, %v1181_v34  ;;  %v1195_v43 = vadd.f32 %v1194_v39, %v1193_v35 }
 0x1eb   : > { %v703_v8 = vld [vmem:[%s1996_s0 + $0x20] sm:$0xff] (!%p1120_p1)  ;;  %v750_v28 = vadd.s32 (!%p1120_p1), %v2042_v11, %v2033_v4  ;;  %v736_v32 = vadd.s32 (!%p1120_p1), 24, %v2033_v4  ;;  %v2072_v33 = vadd.s32 (!%p1120_p1), %v768_v18, %v767_v12  ;;  %v751_v37 = vadd.s32 (!%p1120_p1), %v2042_v11, %v734_v17 }
 0x1ec   : > { %685 = vst [vmem:[%s1996_s0 + $0x30] sm:$0xff] %v669_v40  ;;  %689 = vst [vmem:[%s1996_s0 + $0x50] sm:$0xff] %v673_v41  ;;  %v670_v44 = vadd.f32 %v1183_v42, %v269_v36  ;;  %v674_v45 = vadd.f32 %v1195_v43, %v273_v38  ;;  %v707_v15 = vld [vmem:[%s1996_s0 + $0x40] sm:$0xff] (!%p1120_p1)  ;;  %v2062_v27 = vmul.f32 (!%p1120_p1), 0.0033333334, %v703_v8  ;;  %v737_v41 = vadd.s32 (!%p1120_p1), 32, %v2033_v4 }
 0x1ed   : > { %v704_v9 = vld [vmem:[%s1996_s0 + $0x28] sm:$0xff] (!%p1120_p1)  ;;  %v2076_v35 = vmul.f32 (!%p1120_p1), 0.0033333334, %v707_v15  ;;  %v752_v42 = vadd.s32 (!%p1120_p1), %v2042_v11, %v735_v23  ;;  %vm770_vm0 = vcmp.eq.s32.totalorder (!%p1120_p1), %v750_v28, %v2072_v33  ;;  %vm786_vm1 = vcmp.lt.s32.totalorder (!%p1120_p1), %v750_v28, 200 }
 0x1ee   : > { %686 = vst [vmem:[%s1996_s0 + $0x38] sm:$0xff] %v670_v44  ;;  %690 = vst [vmem:[%s1996_s0 + $0x58] sm:$0xff] %v674_v45  ;;  %v1196_v46 = vpop.f32.mrb[8].mxu1  ;;  %v708_v19 = vld [vmem:[%s1996_s0 + $0x48] sm:$0xff] (!%p1120_p1)  ;;  %v2067_v30 = vmul.f32 (!%p1120_p1), 0.0033333334, %v704_v9  ;;  %vm771_vm2 = vcmp.eq.s32.totalorder (!%p1120_p1), %v751_v37, %v2072_v33 }
 0x1ef   : > { %v1197_v48 = vpop.f32.mrb[9].mxu1  ;;  %v2078_v36 = vmul.f32 (!%p1120_p1), 0.0033333334, %v708_v19  ;;  %vm787_vm3 = vcmp.lt.s32.totalorder (!%p1120_p1), %v751_v37, 200  ;;  %vm772_vm4 = vcmp.eq.s32.totalorder (!%p1120_p1), %v752_v42, %v2072_v33  ;;  %vm788_vm5 = vcmp.lt.s32.totalorder (!%p1120_p1), %v752_v42, 200  ;;  %vm2106_vm6 = vmand (!%p1120_p1), %vm770_vm0, %vm786_vm1 }
 0x1f0   : > { %v1198_v49 = vadd.f32 %v1197_v48, %v1196_v46  ;;  %v1199_v50 = vpop.f32.mrb[10].mxu1  ;;  %v738_v46 = vadd.s32 (!%p1120_p1), 40, %v2033_v4  ;;  %vm2114_vm9 = vmand (!%p1120_p1), %vm771_vm2, %vm787_vm3  ;;  %v1125_v2 = vadd.f32 (!%p1120_p1), -1.0, %v2060_v26  ;;  %v1126_v9 = vadd.f32 (!%p1120_p1), -1.0, %v2062_v27 }
 0x1f1   : > { %v1200_v52 = vpop.f32.mrb[11].mxu1  ;;  %vm2126_vm10 = vmand (!%p1120_p1), %vm772_vm4, %vm788_vm5 }
 0x1f2   : > { %v675_v53 = vadd.f32 %v1198_v49, %v274_v47  ;;  %v1201_v54 = vadd.f32 %v1200_v52, %v1199_v50  ;;  %v753_v47 = vadd.s32 (!%p1120_p1), %v2042_v11, %v736_v32  ;;  %v739_v49 = vadd.s32 (!%p1120_p1), 48, %v2033_v4 }
 0x1f3   : > { %v705_v13 = vld [vmem:[%s1996_s0 + $0x30] sm:$0xff] (!%p1120_p1)  ;;  %v740_v50 = vadd.s32 (!%p1120_p1), 56, %v2033_v4  ;;  %v741_v52 = vadd.s32 (!%p1120_p1), 64, %v2033_v4 }
 0x1f4   : > { %691 = vst [vmem:[%s1996_s0 + $0x60] sm:$0xff] %v675_v53  ;;  %v676_v55 = vadd.f32 %v1201_v54, %v275_v51  ;;  %v709_v20 = vld [vmem:[%s1996_s0 + $0x50] sm:$0xff] (!%p1120_p1)  ;;  %v2069_v31 = vmul.f32 (!%p1120_p1), 0.0033333334, %v705_v13  ;;  %v754_v51 = vadd.s32 (!%p1120_p1), %v2042_v11, %v737_v41  ;;  %v742_v53 = vadd.s32 (!%p1120_p1), 72, %v2033_v4 }
 0x1f5   : > { %v706_v14 = vld [vmem:[%s1996_s0 + $0x38] sm:$0xff] (!%p1120_p1)  ;;  %v2082_v39 = vmul.f32 (!%p1120_p1), 0.0033333334, %v709_v20  ;;  %vm773_vm7 = vcmp.eq.s32.totalorder (!%p1120_p1), %v753_v47, %v2072_v33  ;;  %vm789_vm8 = vcmp.lt.s32.totalorder (!%p1120_p1), %v753_v47, 200  ;;  %v757_v5 = vadd.s32 (!%p1120_p1), %v2042_v11, %v740_v50 }
 0x1f6   : > { %692 = vst [vmem:[%s1996_s0 + $0x68] sm:$0xff] %v676_v55  ;;  %v1202_v56 = vpop.f32.mrb[12].mxu1  ;;  %v710_v21 = vld [vmem:[%s1996_s0 + $0x58] sm:$0xff] (!%p1120_p1)  ;;  %v2074_v34 = vmul.f32 (!%p1120_p1), 0.0033333334, %v706_v14  ;;  %v1122_v55 = vadd.f32 (!%p1120_p1), -1.0, %v2040_v10  ;;  %vm774_vm11 = vcmp.eq.s32.totalorder (!%p1120_p1), %v754_v51, %v2072_v33  ;;  %vm2137_vm13 = vmand (!%p1120_p1), %vm773_vm7, %vm789_vm8  ;;  %v758_v14 = vadd.s32 (!%p1120_p1), %v2042_v11, %v741_v52 }
 0x1f7   : > { %v1203_v58 = vpop.f32.mrb[13].mxu1  ;;  %v2084_v40 = vmul.f32 (!%p1120_p1), 0.0033333334, %v710_v21  ;;  %vm790_vm12 = vcmp.lt.s32.totalorder (!%p1120_p1), %v754_v51, 200  ;;  %v748_v13 = vadd.s32 (!%p1120_p1), 120, %v2033_v4  ;;  %v837_v17 = vsel (!%p1120_p1), %vm2137_vm13, %v1125_v2, %v2060_v26 }
 0x1f8   : > { %v1204_v59 = vadd.f32 %v1203_v58, %v1202_v56  ;;  %v1205_v60 = vpop.f32.mrb[14].mxu1  ;;  %698 = sbr.rel (%p1120_p1) target bundleno = 762 (0x2fa), region = 48  ;;  %v1123_v56 = vadd.f32 (!%p1120_p1), -1.0, %v2047_v16  ;;  %v834_v7 = vsel (!%p1120_p1), %vm2106_vm6, %v1122_v55, %v2040_v10  ;;  %vm2157_vm1 = vmand (!%p1120_p1), %vm774_vm11, %vm790_vm12  ;;  %vm777_vm4 = vcmp.eq.s32.totalorder (!%p1120_p1), %v757_v5, %v2072_v33 }
 0x1f9   : > { %v1206_v62 = vpop.f32.mrb[15].mxu1  ;;  %v850_v15 = vmul.f32 (!%p1120_p1), %v834_v7, %v834_v7  ;;  %vm793_vm5 = vcmp.lt.s32.totalorder (!%p1120_p1), %v757_v5, 200  ;;  %v1128_v23 = vadd.f32 (!%p1120_p1), -1.0, %v2069_v31  ;;  %vm778_vm8 = vcmp.eq.s32.totalorder (!%p1120_p1), %v758_v14, %v2072_v33 }
 0x1fa   : > { %v677_v63 = vadd.f32 %v1204_v59, %v276_v57  ;;  %v1207_v0 = vadd.f32 %v1206_v62, %v1205_v60  ;;  %v755_v57 = vadd.s32 (!%p1120_p1), %v2042_v11, %v738_v46  ;;  %v1124_v59 = vadd.f32 (!%p1120_p1), -1.0, %v2055_v22  ;;  %vm2204_vm12 = vmand (!%p1120_p1), %vm777_vm4, %vm793_vm5 }
 0x1fb   : > { %v711_v24 = vld [vmem:[%s1996_s0 + $0x60] sm:$0xff] (!%p1120_p1)  ;;  %v743_v60 = vadd.s32 (!%p1120_p1), 80, %v2033_v4  ;;  %v745_v62 = vadd.s32 (!%p1120_p1), 96, %v2033_v4  ;;  %v835_v8 = vsel (!%p1120_p1), %vm2114_vm9, %v1123_v56, %v2047_v16  ;;  %v1127_v16 = vadd.f32 (!%p1120_p1), -1.0, %v2067_v30 }
 0x1fc   : > { %693 = vst [vmem:[%s1996_s0 + $0x70] sm:$0xff] %v677_v63  ;;  %v678_v1 = vadd.f32 %v1207_v0, %v277_v61  ;;  %v2088_v43 = vmul.f32 (!%p1120_p1), 0.0033333334, %v711_v24  ;;  %v744_v61 = vadd.s32 (!%p1120_p1), 88, %v2033_v4  ;;  %v756_v63 = vadd.s32 (!%p1120_p1), %v2042_v11, %v739_v49 }
 0x1fd   : > { %v712_v25 = vld [vmem:[%s1996_s0 + $0x68] sm:$0xff] (!%p1120_p1)  ;;  %vm775_vm14 = vcmp.eq.s32.totalorder (!%p1120_p1), %v755_v57, %v2072_v33  ;;  %vm791_vm15 = vcmp.lt.s32.totalorder (!%p1120_p1), %v755_v57, 200  ;;  %v836_v12 = vsel (!%p1120_p1), %vm2126_vm10, %v1124_v59, %v2055_v22  ;;  %v851_v18 = vmul.f32 (!%p1120_p1), %v835_v8, %v835_v8 }
 0x1fe   : > { %694 = vst [vmem:[%s1996_s0 + $0x78] sm:$0xff] %v678_v1  ;;  %v2090_v44 = vmul.f32 (!%p1120_p1), 0.0033333334, %v712_v25  ;;  %v746_v1 = vadd.s32 (!%p1120_p1), 104, %v2033_v4  ;;  %vm776_vm0 = vcmp.eq.s32.totalorder (!%p1120_p1), %v756_v63, %v2072_v33  ;;  %vm792_vm2 = vcmp.lt.s32.totalorder (!%p1120_p1), %v756_v63, 200  ;;  %vm2171_vm3 = vmand (!%p1120_p1), %vm775_vm14, %vm791_vm15 }
 0x1ff   : > { %v759_v4 = vadd.s32 %v2042_v11, %v742_v53  ;;  %v760_v19 = vadd.s32 %v2042_v11, %v743_v60  ;;  %v761_v20 = vadd.s32 %v2042_v11, %v744_v61  ;;  %v852_v22 = vmul.f32 %v836_v12, %v836_v12  ;;  %vm2187_vm7 = vmand %vm776_vm0, %vm792_vm2 }
 0x200   : > { %v838_v24 = vsel %vm2157_vm1, %v1126_v9, %v2062_v27  ;;  %v762_v25 = vadd.s32 %v2042_v11, %v745_v62  ;;  %v2182_v26 = vadd.s32 %v2042_v11, %v746_v1  ;;  %v866_v32 = vadd.f32 %v851_v18, %v850_v15 }
 0x201   : > { %vm794_vm11 = vcmp.lt.s32.totalorder %v758_v14, 200  ;;  %v1129_v37 = vadd.f32 -1.0, %v2074_v34  ;;  %v839_v27 = vsel %vm2171_vm3, %v1127_v16, %v2067_v30  ;;  %v2200_v41 = vadd.s32 %v2042_v11, %v748_v13 }
 0x202   : > { %v854_v46 = vmul.f32 %v838_v24, %v838_v24  ;;  %v867_v47 = vadd.f32 %v866_v32, %v852_v22  ;;  %vm779_vm14 = vcmp.eq.s32.totalorder %v759_v4, %v2072_v33  ;;  %vm795_vm15 = vcmp.lt.s32.totalorder %v759_v4, 200  ;;  %vm2213_vm0 = vmand %vm778_vm8, %vm794_vm11 }
 0x203   : > { %v713_v29 = vld [vmem:[%s1996_s0 + $0x70] sm:$0xff]  ;;  %v1130_v49 = vadd.f32 -1.0, %v2076_v35  ;;  %v840_v30 = vsel %vm2187_vm7, %v1128_v23, %v2069_v31  ;;  %v855_v50 = vmul.f32 %v839_v27, %v839_v27  ;;  %v891_v52 = vsel %vm2106_vm6, %v850_v15, 0.0  ;;  %vm2227_vm8 = vmand %vm779_vm14, %vm795_vm15 }
 0x204   : > { %v2092_v45 = vmul.f32 0.0033333334, %v713_v29  ;;  %v853_v29 = vmul.f32 %v837_v17, %v837_v17  ;;  %v892_v53 = vsel %vm2114_vm9, %v851_v18, 0.0  ;;  %vm780_vm2 = vcmp.eq.s32.totalorder %v760_v19, %v2072_v33 }
 0x205   : > { %v714_v38 = vld [vmem:[%s1996_s0 + $0x78] sm:$0xff]  ;;  %vm796_vm4 = vcmp.lt.s32.totalorder %v760_v19, 200  ;;  %v1131_v55 = vadd.f32 -1.0, %v2078_v36  ;;  %v841_v31 = vsel %vm2204_vm12, %v1129_v37, %v2074_v34  ;;  %vm781_vm5 = vcmp.eq.s32.totalorder %v761_v20, %v2072_v33 }
 0x206   : > { %v2097_v48 = vmul.f32 0.0033333334, %v714_v38  ;;  %v2197_v38 = vadd.s32 %v2042_v11, %v747_v3  ;;  %v868_v51 = vadd.f32 %v867_v47, %v853_v29  ;;  %v856_v54 = vmul.f32 %v840_v30, %v840_v30  ;;  %vm2238_vm11 = vmand %vm780_vm2, %vm796_vm4 }
 0x207   : > { %v893_v58 = vsel %vm2126_vm10, %v852_v22, 0.0  ;;  %vm797_vm6 = vcmp.lt.s32.totalorder %v761_v20, 200  ;;  %v1132_v59 = vadd.f32 -1.0, %v2082_v39  ;;  %v842_v60 = vsel %vm2213_vm0, %v1130_v49, %v2076_v35 }
 0x208   : > { %v869_v57 = vadd.f32 %v868_v51, %v854_v46  ;;  %v907_v61 = vadd.f32 %v892_v53, %v891_v52  ;;  %vm782_vm9 = vcmp.eq.s32.totalorder %v762_v25, %v2072_v33  ;;  %v857_v62 = vmul.f32 %v841_v31, %v841_v31  ;;  %vm2252_vm15 = vmand %vm781_vm5, %vm797_vm6 }
 0x209   : > { %v894_v0 = vsel %vm2137_vm13, %v853_v29, 0.0  ;;  %vm798_vm10 = vcmp.lt.s32.totalorder %v762_v25, 200  ;;  %v1133_v1 = vadd.f32 -1.0, %v2084_v40  ;;  %v843_v2 = vsel %vm2227_vm8, %v1131_v55, %v2078_v36 }
 0x20a   : > { %v870_v63 = vadd.f32 %v869_v57, %v855_v50  ;;  %v908_v35 = vadd.f32 %v907_v61, %v893_v58  ;;  %vm783_vm14 = vcmp.eq.s32.totalorder %v2182_v26, %v2072_v33  ;;  %v858_v5 = vmul.f32 %v842_v60, %v842_v60  ;;  %vm2267_vm4 = vmand %vm782_vm9, %vm798_vm10 }
 0x20b   : > { %v895_v7 = vsel %vm2157_vm1, %v854_v46, 0.0  ;;  %vm799_vm13 = vcmp.lt.s32.totalorder %v2182_v26, 200  ;;  %v1134_v8 = vadd.f32 -1.0, %v2088_v43  ;;  %v844_v36 = vsel %vm2238_vm11, %v1132_v59, %v2082_v39 }
 0x20c   : > { %v871_v6 = vadd.f32 %v870_v63, %v856_v54  ;;  %v909_v9 = vadd.f32 %v908_v35, %v894_v0  ;;  %vm784_vm2 = vcmp.eq.s32.totalorder %v2197_v38, %v2072_v33  ;;  %v859_v13 = vmul.f32 %v843_v2, %v843_v2  ;;  %vm2283_vm6 = vmand %vm783_vm14, %vm799_vm13 }
 0x20d   : > { %v896_v10 = vsel %vm2171_vm3, %v855_v50, 0.0  ;;  %vm800_vm1 = vcmp.lt.s32.totalorder %v2197_v38, 200  ;;  %v1135_v15 = vadd.f32 -1.0, %v2090_v44  ;;  %v845_v39 = vsel %vm2252_vm15, %v1133_v1, %v2084_v40 }
 0x20e   : > { %v872_v14 = vadd.f32 %v871_v6, %v857_v62  ;;  %v910_v16 = vadd.f32 %v909_v9, %v895_v7  ;;  %vm785_vm5 = vcmp.eq.s32.totalorder %v2200_v41, %v2072_v33  ;;  %v860_v18 = vmul.f32 %v844_v36, %v844_v36  ;;  %vm2297_vm9 = vmand %vm784_vm2, %vm800_vm1 }
 0x20f   : > { %v897_v19 = vsel %vm2187_vm7, %v856_v54, 0.0  ;;  %vm801_vm3 = vcmp.lt.s32.totalorder %v2200_v41, 200  ;;  %v1136_v40 = vadd.f32 -1.0, %v2092_v45  ;;  %v846_v20 = vsel %vm2267_vm4, %v1134_v8, %v2088_v43 }
 0x210   : > { %v873_v4 = vadd.f32 %v872_v14, %v858_v5  ;;  %v911_v21 = vadd.f32 %v910_v16, %v896_v10  ;;  %v861_v23 = vmul.f32 %v845_v39, %v845_v39  ;;  %v898_v25 = vsel %vm2204_vm12, %v857_v62, 0.0  ;;  %vm2310_vm7 = vmand %vm785_vm5, %vm801_vm3 }
 0x211   : > { %v1137_v26 = vadd.f32 -1.0, %v2097_v48  ;;  %v847_v28 = vsel %vm2283_vm6, %v1135_v15, %v2090_v44  ;;  %v862_v32 = vmul.f32 %v846_v20, %v846_v20  ;;  %v899_v27 = vsel %vm2213_vm0, %v858_v5, 0.0 }
 0x212   : > { %v874_v24 = vadd.f32 %v873_v4, %v859_v13  ;;  %v912_v43 = vadd.f32 %v911_v21, %v897_v19  ;;  %v848_v38 = vsel %vm2297_vm9, %v1136_v40, %v2092_v45  ;;  %v863_v46 = vmul.f32 %v847_v28, %v847_v28 }
 0x213   : > { %v900_v47 = vsel %vm2227_vm8, %v859_v13, 0.0  ;;  %v849_v33 = vsel %vm2310_vm7, %v1137_v26, %v2097_v48  ;;  %v864_v49 = vmul.f32 %v848_v38, %v848_v38  ;;  %v901_v11 = vsel %vm2238_vm11, %v860_v18, 0.0  ;;  %v933_v13 = vld [vmem:[%s1956_s4] sm:$0xff] }
 0x214   : > { %v875_v37 = vadd.f32 %v874_v24, %v860_v18  ;;  %v913_v42 = vadd.f32 %v912_v43, %v898_v25  ;;  %v865_v51 = vmul.f32 %v849_v33, %v849_v33  ;;  %v902_v45 = vsel %vm2252_vm15, %v861_v23, 0.0 }
 0x215   : > { %v903_v31 = vsel %vm2267_vm4, %v862_v32, 0.0  ;;  %v904_v48 = vsel %vm2283_vm6, %v863_v46, 0.0  ;;  %v905_v58 = vsel %vm2297_vm9, %v864_v49, 0.0 }
 0x216   : > { %v876_v44 = vadd.f32 %v875_v37, %v861_v23  ;;  %v914_v41 = vadd.f32 %v913_v42, %v899_v27  ;;  %v906_v60 = vsel %vm2310_vm7, %v865_v51, 0.0 }
 0x218   : > { %v877_v30 = vadd.f32 %v876_v44, %v862_v32  ;;  %v915_v50 = vadd.f32 %v914_v41, %v900_v47 }
 0x21a   : > { %v878_v52 = vadd.f32 %v877_v30, %v863_v46  ;;  %v916_v53 = vadd.f32 %v915_v50, %v901_v11 }
 0x21c   : > { %v879_v55 = vadd.f32 %v878_v52, %v864_v49  ;;  %v917_v56 = vadd.f32 %v916_v53, %v902_v45 }
 0x21e   : > { %v880_v54 = vadd.f32 %v879_v55, %v865_v51  ;;  %v918_v57 = vadd.f32 %v917_v56, %v903_v31 }
 0x220   : > { %881 = vadd.xlane.f32.xlu0 %v880_v54  ;;  %v919_v59 = vadd.f32 %v918_v57, %v904_v48 }
 0x222   : > { %v920_v61 = vadd.f32 %v919_v59, %v905_v58 }
 0x224   : > { %v921_v34 = vadd.f32 %v920_v61, %v906_v60 }
 0x226   : > { %922 = vadd.xlane.f32.xlu0 %v921_v34 }
 0x2ad   : > { %v882_v62 = vpop.xlane.xlu0 %881 }
 0x2ae   : > { %v883_v63 = vrot.slane %v882_v62, 4 }
 0x2b0   : > { %v884_v0 = vadd.f32 %v883_v63, %v882_v62 }
 0x2b2   : > { %v885_v1 = vrot.slane %v884_v0, 2 }
 0x2b3   : > { %v923_v2 = vpop.xlane.xlu0 %922 }
 0x2b4   : > { %v886_v35 = vadd.f32 %v885_v1, %v884_v0  ;;  %v924_v3 = vrot.slane %v923_v2, 4 }
 0x2b6   : > { %v887_v5 = vrot.slane %v886_v35, 1  ;;  %v925_v6 = vadd.f32 %v924_v3, %v923_v2 }
 0x2b8   : > { %v888_v7 = vadd.f32 %v887_v5, %v886_v35  ;;  %v926_v8 = vrot.slane %v925_v6, 2 }
 0x2ba   : > { %1224 = vpush %v888_v7  ;;  %v927_v36 = vadd.f32 %v926_v8, %v925_v6 }
 0x2bc   : > { %v928_v9 = vrot.slane %v927_v36, 1 }
 0x2be   : > { %v929_v12 = vadd.f32 %v928_v9, %v927_v36 }
 0x2c0   : > { %1226 = vpush %v929_v12 }
 0x2eb   : > { %s1225_s18 = spop %1224 }
 0x2ec   : > { %s890_s19 = smul.f32 0.005, %s1225_s18 }
 0x2f1   : > { %s1227_s3 = spop %1226 }
 0x2f2   : > { %s931_s12 = smul.f32 0.995, %s1227_s3 }
 0x2f4   : > { %s932_s27 = sadd.f32 %s931_s12, %s890_s19 }
 0x2f6   : > { %v934_v14 = vstv %s932_s27 }
 0x2f7   : > { %v935_v10 = vadd.f32 %v934_v14, %v933_v13 }
 0x2f9   : > { %936 = vst [vmem:[%s1956_s4] sm:$0xff] %v935_v10 }
 0x2fa PF: > { %s2510_s9 = sld [smem:[#allocation13_spill]]  ;;  %s2511_s26 = sld [smem:[#allocation17_spill]] }
 0x2fb   : > { %s2512_s30 = sld [smem:[#allocation22_spill]]  ;;  %s951_s25 = sshll.u32 %s1956_s4, 4  ;;  %s952_s25 = int_to_ptr.vmem [resolvable:$true] %s951_s25 }
 0x2fc   : > { %s938_s8 = scalar_lea.sflag [#allocation5], %s226_s29  ;;  %s1472_s0 = scalar_lea.vmem %s952_s25, 128 }
 0x2fd   : > { %p1473_p4 = scmp.ne.s32.totalorder %s952_s25, %s1472_s0  ;;  %s1647_s20 = smov [#allocation8]  }
 0x2fe   : > { %s1476_s23 = sshll.u32 %s1647_s20, 4  ;;  %s1477_s23 = int_to_ptr.vmem [resolvable:$false] %s1476_s23 }
 0x2ff   : > { %s1478_s18 = scalar_lea.vmem %s1477_s23, 256  ;;  %p1479_p6 = scmp.lt.s32.totalorder %s952_s25, %s1477_s23 }
 0x300   : > { %s1139_s5 = sshll.u32 %s2510_s9, 7  ;;  %p2513_p10 = scmp.ne.s32.totalorder %s2511_s26, 0 }
 0x301   : > { %s2342_s6 = scalar_lea.hbm %s2512_s30, %s1139_s5  ;;  %p1480_p7 = scmp.lt.s32.totalorder %s1478_s18, %s1472_s0 }
 0x302   : > { %p1474_p11 = pnand %p1473_p4, %p2513_p10 }
 0x303   : > { %p1481_p2 = por %p1480_p7, %p1479_p6 }
 0x304   : > { %p1475_p0 = pneg %p1474_p11 }
 0x306   : > { %p1482_p8 = pnand %p1481_p2, %p1475_p0 }
 0x308   : > { %1485 = shalt.err (!%p1482_p8)
}
 0x309   : > { %s1486_s29 = scalar_lea.hbm %s2342_s6, 128  ;;  %s1490_s3 = scalar_lea.hbm %s2512_s30, 256 }
 0x30a   : > { %p1487_p9 = scmp.ne.s32.totalorder %s2342_s6, %s1486_s29  ;;  %p1491_p12 = scmp.lt.u32.totalorder %s2342_s6, %s2512_s30 }
 0x30b   : > { %p1492_p13 = scmp.lt.u32.totalorder %s1490_s3, %s1486_s29  ;;  %p1494_p4 = scmp.lt.u32.totalorder %s1486_s29, %s2342_s6 }
 0x30c   : > { %p1488_p3 = pnand %p1487_p9, %p2513_p10 }
 0x30d   : > { %p1493_p1 = por %p1492_p13, %p1491_p12 }
 0x30e   : > { %p1489_p5 = pneg %p1488_p3 }
 0x30f   : > { %p1495_p11 = por %p1494_p4, %p1493_p1 }
 0x311   : > { %p1496_p0 = pnand %p1495_p11, %p1489_p5 }
 0x313   : > { %1499 = shalt.err (!%p1496_p0)
}
 0x314   : > { %1232 = dma.vmem_to_hbm [thread:$0]  (%p2513_p10), %s952_s25, 128, %s2342_s6, %s938_s8  }
 0x315 PF: > { %s2514_s9 = sld [smem:[#allocation12_spill]]  ;;  %s2515_s5 = sld [smem:[#allocation20_spill]] }
 0x316   : > { %p1246_p6 = scmp.ge.s32.totalorder %s1638_s24, 2 }
 0x31b   : > { %s963_s28 = sand.u32 1, %s2514_s9   ;;  %p2516_p7 = scmp.ne.s32.totalorder %s2515_s5, 0 }
 0x31c   : > { %s964_s7 = scalar_lea.sflag [#allocation5], %s963_s28 }
 0x31d   : > { %p1242_p2 = pnand %p1246_p6, %p2516_p7 }
 0x31f   : > { %1573 = dma.done.wait (!%p1242_p2), %s964_s7, 128  }
 0x320   : > { %1575 = vsyncadd (!%p1242_p2), %s964_s7, 4294967168  ;;  %s21_s24 = sadd.s32 1, %s1638_s24   ;;  %s2518_s26 = sld [smem:[#allocation19_spill]] }
 0x321   : > { %p2369_p8 = scmp.ge.s32.totalorder %s21_s24, 10   ;;  %s2519_s6 = smov %s1881_s15 }
 0x322   : > { %s2520_s20 = sld [smem:[#allocation14_spill]]  ;;  %s2521_s25 = sld [smem:[#allocation15_spill]] }
 0x323   : > { %s2522_s8 = sld [smem:[#allocation16_spill]]  ;;  %s2523_s23 = sld [smem:[#allocation18_spill]] }
 0x324   : > { %s2524_s9 = smov %s1582_s10  ;;  %s2525_s10 = smov %s1586_s11 }
 0x325   : > { %s2526_s11 = smov %s1876_s2  ;;  %s2527_s12 = smov %s1594_s13 }
 0x326   : > { %s2528_s13 = smov %s1598_s14  ;;  %s2529_s14 = smov %s2518_s26 }
 0x327   : > { %s2530_s15 = smov %s1606_s16  ;;  %s2531_s16 = smov %s1610_s17 }
 0x328   : > { %s2532_s17 = smov %s2519_s6  ;;  %s2533_s18 = smov %s1626_s21 }
 0x329   : > { %s2534_s19 = smov %s1630_s22  ;;  %s2535_s21 = smov %s2521_s25 }
 0x32a   : > { %s2536_s22 = smov %s2522_s8  ;;  %20 = sbr.rel (!%p2369_p8) target bundleno = 16 (0x10), region = 100 }
 0x331   :  { %969 = vsyncpa [#allocation4], 1 }
 0x332   :  { %971 = vsyncpa [#allocation4 + $0x1], 1 }
 0x333   :  { %972 = vsyncpa [#allocation7], 1 }
 0x334   :  { %974 = vsyncpa [#allocation7 + $0x1], 1 }
 0x335   :  { %975 = vsyncpa [#allocation5], 1 }
 0x336   :  { %977 = vsyncpa [#allocation5 + $0x1], 1 }

</bundles_post_ra>
